<compile_context>
chip_gen: v5e
topology: v5e:2x2
jax: 0.10.0
libtpu: 0.0.40
codegen_flags: <defaults>
</compile_context>

<pallas_src>
import functools
import math

import jax
import jax.numpy as jnp
from jax.experimental import pallas as pl
from jax.experimental.pallas import tpu as pltpu


def _conv_shift_kernel(p_ref, w_ref, b_ref, o_ref, *,
                       N, HoWo, int_bits, frac_bits):
    """Whole problem in one invocation.

    p_ref : (K, N*Ho*Wo)   raw (un-quantized) im2col patches, lane-dense
    w_ref : (Cout, K)      power-of-two weights, columns ordered (cin, kh, kw)
    b_ref : (Cout, 1)      fixed-point-rounded bias
    o_ref : (N, Cout, Ho*Wo)
    """
    # --- ste.round_fixed_point on activations (elementwise, commutes with the
    # wrapper-side gather; padding zeros stay zero). ---------------------------
    inv_delta = 2.0 ** frac_bits
    delta = 2.0 ** (-frac_bits)
    bound = 2.0 ** (int_bits - 1)
    patch_q = jnp.clip(jnp.floor(p_ref[...] * inv_delta) * delta,
                       -bound, bound - 1.0)

    # --- single MXU matmul, standard orientation: (Cout,K) x (K, N*HoWo) ------
    acc = jax.lax.dot_general(
        w_ref[...], patch_q,
        dimension_numbers=(((1,), (0,)), ((), ())),
        preferred_element_type=jnp.float32)          # (Cout, N*HoWo)
    acc = acc + b_ref[...]                           # bias epilogue (lane broadcast)

    # --- per-image lane slabs (HoWo is a multiple of 128 here -> unmasked) ----
    for n in range(N):
        o_ref[n] = acc[:, n * HoWo:(n + 1) * HoWo].astype(o_ref.dtype)


def conv2d_shift(x_nchw, shift, sign, bias, *,
                 stride=(1, 1), padding=(1, 1), dilation=(1, 1),
                 weight_bits=5, act_integer_bits=16, act_fraction_bits=16):
    """Forward of Conv2dShift. x_nchw: (N, Cin, H, W). Returns (N, Cout, Ho, Wo)."""
    # TODO(synk): groups > 1 and padding_mode='circular' are not implemented.
    N, Cin, H, W = x_nchw.shape
    Cout, _, KH, KW = shift.shape
    sh, sw = stride
    ph, pw = padding
    dh, dw = dilation

    # --- parameter quantization (cheap glue, plain JAX) ---
    shift_lo, shift_hi = -(2 ** (weight_bits - 1) - 2), 0
    shift_r = jnp.round(jnp.clip(shift, shift_lo, shift_hi))
    sign_r = jnp.sign(jnp.round(sign))                  # ste.sign(ste.round(...))
    weight_ps = (2.0 ** shift_r) * sign_r               # (Cout, Cin, KH, KW)

    # Flatten weights to (Cout, Cin*KH*KW); column order (cin, kh, kw) matches
    # conv_general_dilated_patches' output-channel ordering.
    K = Cin * KH * KW
    w_flat = weight_ps.reshape(Cout, K).astype(jnp.float32)

    delta = 2.0 ** (-act_fraction_bits)
    bound = 2.0 ** (act_integer_bits - 1)
    bias_q = jnp.clip(jnp.floor(bias / delta) * delta, -bound, bound - 1.0)
    b_col = bias_q.reshape(Cout, 1).astype(jnp.float32)

    Ho = (H + 2 * ph - dh * (KH - 1) - 1) // sh + 1
    Wo = (W + 2 * pw - dw * (KW - 1) - 1) // sw + 1
    HoWo = Ho * Wo
    M = N * HoWo

    # --- im2col in the wrapper: one fused XLA op that also folds the zero
    # padding (no separate transpose/pad HBM round-trips).  Output channel dim
    # is ordered (cin, kh, kw); precision=HIGHEST keeps the gather bit-exact. --
    patches = jax.lax.conv_general_dilated_patches(
        x_nchw.astype(jnp.float32),
        filter_shape=(KH, KW),
        window_strides=(sh, sw),
        padding=((ph, ph), (pw, pw)),
        rhs_dilation=(dh, dw),
        dimension_numbers=("NCHW", "OIHW", "NCHW"),
        precision=jax.lax.Precision.HIGHEST)          # (N, K, Ho, Wo)
    # Present the kernel a lane-dense (K, N*Ho*Wo) RHS (K on sublanes).
    patch = jnp.transpose(patches.reshape(N, K, HoWo), (1, 0, 2)).reshape(K, M)

    kernel = functools.partial(
        _conv_shift_kernel,
        N=N, HoWo=HoWo, int_bits=act_integer_bits, frac_bits=act_fraction_bits)

    flops = 2 * M * Cout * K
    bytes_accessed = 4 * (patch.size + w_flat.size + b_col.size + Cout * M)

    out = pl.pallas_call(
        kernel,
        out_shape=jax.ShapeDtypeStruct((N, Cout, HoWo), jnp.float32),
        grid=(1,),
        in_specs=[
            pl.BlockSpec((K, M), lambda i: (0, 0)),
            pl.BlockSpec((Cout, K), lambda i: (0, 0)),
            pl.BlockSpec((Cout, 1), lambda i: (0, 0)),
        ],
        out_specs=pl.BlockSpec((N, Cout, HoWo), lambda i: (0, 0, 0)),
        compiler_params=pltpu.CompilerParams(
            dimension_semantics=("arbitrary",)),
        cost_estimate=pl.CostEstimate(
            flops=flops, transcendentals=0, bytes_accessed=bytes_accessed),
    )(patch, w_flat, b_col)

    # Output is already (N, Cout, Ho*Wo) in NCHW order — free reshape only.
    return out.reshape(N, Cout, Ho, Wo)


def _reference(x_nchw, shift, sign, bias, *, stride, padding, dilation,
               weight_bits=5, act_integer_bits=16, act_fraction_bits=16):
    """Plain-JAX reference mirroring the PyTorch forward (for verification)."""
    shift_lo, shift_hi = -(2 ** (weight_bits - 1) - 2), 0
    shift_r = jnp.round(jnp.clip(shift, shift_lo, shift_hi))
    sign_r = jnp.sign(jnp.round(sign))
    weight_ps = (2.0 ** shift_r) * sign_r
    delta = 2.0 ** (-act_fraction_bits)
    bound = 2.0 ** (act_integer_bits - 1)
    xq = jnp.clip(jnp.floor(x_nchw / delta) * delta, -bound, bound - 1.0)
    bq = jnp.clip(jnp.floor(bias / delta) * delta, -bound, bound - 1.0)
    out = jax.lax.conv_general_dilated(
        xq, weight_ps, window_strides=stride,
        padding=[(padding[0], padding[0]), (padding[1], padding[1])],
        rhs_dilation=dilation,
        dimension_numbers=("NCHW", "OIHW", "NCHW"),
        precision=jax.lax.Precision.HIGHEST)
    return out + bq.reshape(1, -1, 1, 1)


if __name__ == "__main__":
    # Module config: Conv2dShift(4, 8, kernel_size=3, stride=1, padding=1, bias=True)
    in_channels, out_channels, ksize = 4, 8, 3
    stride, padding, dilation = (1, 1), (1, 1), (1, 1)

    key = jax.random.PRNGKey(0)
    k_shift, k_sign, k_bias, k_x = jax.random.split(key, 4)

    # reset_parameters():
    shift = jax.random.uniform(k_shift, (out_channels, in_channels, ksize, ksize),
                               minval=-10.0, maxval=-1.0, dtype=jnp.float32)
    sign = jax.random.uniform(k_sign, (out_channels, in_channels, ksize, ksize),
                              minval=-1.0, maxval=1.0, dtype=jnp.float32)
    fan_in = in_channels * ksize * ksize
    b_bound = 1.0 / math.sqrt(fan_in)
    bias = jax.random.uniform(k_bias, (out_channels,),
                              minval=-b_bound, maxval=b_bound, dtype=jnp.float32)

    x = jax.random.normal(k_x, (2, in_channels, 16, 16), dtype=jnp.float32)

    out = conv2d_shift(x, shift, sign, bias,
                       stride=stride, padding=padding, dilation=dilation)
    out = jax.block_until_ready(out)

    ref = _reference(x, shift, sign, bias,
                     stride=stride, padding=padding, dilation=dilation)
    ref = jax.block_until_ready(ref)

    assert out.shape == (2, out_channels, 16, 16), out.shape
    err = float(jnp.max(jnp.abs(out - ref)))
    if err > 1e-4:
        raise AssertionError(f"mismatch vs reference: max abs err {err}")

    print("KERNEL_OK")
</pallas_src>

<mosaic_0001>
module attributes {stable_mosaic.version = 11 : i64} {
  func.func @_conv_shift_kernel(%arg0: i32, %arg1: memref<36x512xf32, #tpu.memory_space<vmem>>, %arg2: memref<8x36xf32, #tpu.memory_space<vmem>>, %arg3: memref<8x1xf32, #tpu.memory_space<vmem>>, %arg4: memref<2x8x256xf32, #tpu.memory_space<vmem>>) attributes {dimension_semantics = [#tpu.dimension_semantics<arbitrary>], iteration_bounds = array<i64: 1>, scalar_prefetch = 0 : i64, scratch_operands = 0 : i64, tpu.core_type = #tpu.core_type<tc>, window_params = [{pipeline_mode = #tpu.pipeline_mode<synchronous>, transform_indices = @transform_0, window_bounds = array<i64: 36, 512>}, {pipeline_mode = #tpu.pipeline_mode<synchronous>, transform_indices = @transform_1, window_bounds = array<i64: 8, 36>}, {pipeline_mode = #tpu.pipeline_mode<synchronous>, transform_indices = @transform_2, window_bounds = array<i64: 8, 1>}, {pipeline_mode = #tpu.pipeline_mode<synchronous>, transform_indices = @transform_3, window_bounds = array<i64: 2, 8, 256>}]} {
    %c0 = arith.constant 0 : index
    %c0_0 = arith.constant 0 : index
    %0 = vector.load %arg1[%c0, %c0_0] : memref<36x512xf32, #tpu.memory_space<vmem>>, vector<36x512xf32>
    %cst = arith.constant 6.553600e+04 : f32
    %1 = vector.broadcast %cst : f32 to vector<36x512xf32>
    %2 = arith.mulf %0, %1 : vector<36x512xf32>
    %3 = math.floor %2 : vector<36x512xf32>
    %cst_1 = arith.constant 1.52587891E-5 : f32
    %4 = vector.broadcast %cst_1 : f32 to vector<36x512xf32>
    %5 = arith.mulf %3, %4 : vector<36x512xf32>
    %cst_2 = arith.constant -3.276800e+04 : f32
    %cst_3 = arith.constant 3.276700e+04 : f32
    %6 = vector.broadcast %cst_2 : f32 to vector<36x512xf32>
    %7 = arith.maximumf %6, %5 : vector<36x512xf32>
    %8 = vector.broadcast %cst_3 : f32 to vector<36x512xf32>
    %9 = arith.minimumf %8, %7 : vector<36x512xf32>
    %c0_4 = arith.constant 0 : index
    %c0_5 = arith.constant 0 : index
    %10 = vector.load %arg2[%c0_4, %c0_5] : memref<8x36xf32, #tpu.memory_space<vmem>>, vector<8x36xf32>
    %cst_6 = arith.constant dense<0.000000e+00> : vector<8x512xf32>
    %11 = tpu.matmul %10, %9, %cst_6 {dimension_numbers = #tpu.dot_dimension_numbers<[1], [0], [0], [1], [0, 0, 1, 1], [], []>} : vector<8x36xf32>, vector<36x512xf32>, vector<8x512xf32> -> vector<8x512xf32>
    %c0_7 = arith.constant 0 : index
    %c0_8 = arith.constant 0 : index
    %12 = vector.load %arg3[%c0_7, %c0_8] : memref<8x1xf32, #tpu.memory_space<vmem>>, vector<8x1xf32>
    %13 = vector.broadcast %12 : vector<8x1xf32> to vector<8x512xf32>
    %14 = arith.addf %11, %13 : vector<8x512xf32>
    %15 = vector.extract_strided_slice %14 {offsets = [0, 0], sizes = [8, 256], strides = [1, 1]} : vector<8x512xf32> to vector<8x256xf32>
    %c0_9 = arith.constant 0 : index
    %c0_10 = arith.constant 0 : index
    %c0_11 = arith.constant 0 : index
    %16 = vector.load %arg4[%c0_9, %c0_10, %c0_11] : memref<2x8x256xf32, #tpu.memory_space<vmem>>, vector<1x8x256xf32>
    %17 = vector.shape_cast %16 : vector<1x8x256xf32> to vector<8x256xf32>
    %18 = vector.shape_cast %15 : vector<8x256xf32> to vector<1x8x256xf32>
    tpu.vector_store %arg4[%c0_9, %c0_10, %c0_11], %18 {strides = array<i32>} : memref<2x8x256xf32, #tpu.memory_space<vmem>>, vector<1x8x256xf32>,
    %19 = vector.extract_strided_slice %14 {offsets = [0, 256], sizes = [8, 256], strides = [1, 1]} : vector<8x512xf32> to vector<8x256xf32>
    %c1 = arith.constant 1 : index
    %c0_12 = arith.constant 0 : index
    %c0_13 = arith.constant 0 : index
    %20 = vector.load %arg4[%c1, %c0_12, %c0_13] : memref<2x8x256xf32, #tpu.memory_space<vmem>>, vector<1x8x256xf32>
    %21 = vector.shape_cast %20 : vector<1x8x256xf32> to vector<8x256xf32>
    %22 = vector.shape_cast %19 : vector<8x256xf32> to vector<1x8x256xf32>
    tpu.vector_store %arg4[%c1, %c0_12, %c0_13], %22 {strides = array<i32>} : memref<2x8x256xf32, #tpu.memory_space<vmem>>, vector<1x8x256xf32>,
    return
  }
  func.func @transform_0(%arg0: i32) -> (i32, i32) {
    %c0_i32 = arith.constant 0 : i32
    %c0_i32_0 = arith.constant 0 : i32
    %c0_i32_1 = arith.constant 0 : i32
    return %c0_i32, %c0_i32_0 : i32, i32
  }
  func.func @transform_1(%arg0: i32) -> (i32, i32) {
    %c0_i32 = arith.constant 0 : i32
    %c0_i32_0 = arith.constant 0 : i32
    %c0_i32_1 = arith.constant 0 : i32
    return %c0_i32, %c0_i32_0 : i32, i32
  }
  func.func @transform_2(%arg0: i32) -> (i32, i32) {
    %c0_i32 = arith.constant 0 : i32
    %c0_i32_0 = arith.constant 0 : i32
    %c0_i32_1 = arith.constant 0 : i32
    return %c0_i32, %c0_i32_0 : i32, i32
  }
  func.func @transform_3(%arg0: i32) -> (i32, i32, i32) {
    %c0_i32 = arith.constant 0 : i32
    %c0_i32_0 = arith.constant 0 : i32
    %c0_i32_1 = arith.constant 0 : i32
    %c0_i32_2 = arith.constant 0 : i32
    return %c0_i32, %c0_i32_0, %c0_i32_1 : i32, i32, i32
  }
}

</mosaic_0001>

<bundles_post_ra>
// kernel: tpu_custom_call.1
= control target key start
LH: loop header
LB: loop body
LE: loop exit
PB: predicated region body
PF: predicated region fallthrough
CT: control target
= control target key end

     0   :  { %8 = vsyncpa [#allocation3], 0  ;;  %s394_s0 = inlined_call_operand.hbm [shape: f32[36,512], index: 0, kind: input, shape index: {}]   ;;  %s395_s1 = inlined_call_operand.vmem [shape: f32[8,36], index: 1, kind: input, shape index: {}]   ;;  %s396_s2 = inlined_call_operand.vmem [shape: f32[8,1], index: 2, kind: input, shape index: {}]   ;;  %s397_s3 = inlined_call_operand.hbm [shape: f32[2,8,256], index: 3, kind: output, shape index: {}]  }
   0x1   :  { %9 = vsyncpa [#allocation4], 0  ;;  %s14_s14 = sshll.u32 %s394_s0, 4  ;;  %s347_s15 = smov [#allocation2]   ;;  %s15_s14 = int_to_ptr.hbm [resolvable:$true] %s14_s14 }
   0x2   :  { %s16_s16 = sshll.u32 %s347_s15, 4  ;;  %s348_s17 = smov 512   ;;  %s17_s16 = int_to_ptr.vmem [resolvable:$true] %s16_s16 }
   0x3   :  { %s349_s18 = smov 32  }
   0x4   :  { %22 = dma.hbm_to_vmem [thread:$0]  %s15_s14, 2560, %s17_s16, [#allocation3], %s348_s17, %s348_s17, %s349_s18  }
   0x5   :  { %343 = dma.done.wait [#allocation3], 2560  }
   0x6   :  { %344 = vsyncadd [#allocation3], 4294964736  ;;  %v49_v0 = vld [vmem:[#allocation2 + $0x90] sm:$0xf]  ;;  %v50_v1 = vld [vmem:[#allocation2 + $0x98] sm:$0xf] }
   0x7   :  { %v45_v2 = vld [vmem:[#allocation2 + $0x70] sm:$0xff]  ;;  %v69_v3 = vmul.f32 65536.0, %v49_v0  ;;  %v70_v4 = vmul.f32 65536.0, %v50_v1  ;;  %v46_v6 = vld [vmem:[#allocation2 + $0x78] sm:$0xff]  ;;  %vm162_vm0 = vcmask 1043456   ;;  %v43_v36 = vld [vmem:[#allocation2 + $0x60] sm:$0xff] }
   0x8   :  { %v65_v5 = vmul.f32 65536.0, %v45_v2  ;;  %v41_v7 = vld [vmem:[#allocation2 + $0x50] sm:$0xff]  ;;  %v42_v8 = vld [vmem:[#allocation2 + $0x58] sm:$0xff]  ;;  %v66_v9 = vmul.f32 65536.0, %v46_v6  ;;  %v47_v12 = vld [vmem:[#allocation2 + $0x80] sm:$0xf] }
   0x9   :  { %v61_v10 = vmul.f32 65536.0, %v41_v7  ;;  %v62_v11 = vmul.f32 65536.0, %v42_v8  ;;  %v89_v13 = vfloor.f32 %v69_v3  ;;  %v90_v14 = vfloor.f32 %v70_v4  ;;  %v48_v17 = vld [vmem:[#allocation2 + $0x88] sm:$0xf]  ;;  %v37_v30 = vld [vmem:[#allocation2 + $0x30] sm:$0xff]  ;;  %v38_v31 = vld [vmem:[#allocation2 + $0x38] sm:$0xff] }
   0xa   :  { %v85_v15 = vfloor.f32 %v65_v5  ;;  %v67_v16 = vmul.f32 65536.0, %v47_v12  ;;  %v86_v18 = vfloor.f32 %v66_v9  ;;  %v68_v21 = vmul.f32 65536.0, %v48_v17  ;;  %v44_v37 = vld [vmem:[#allocation2 + $0x68] sm:$0xff]  ;;  %v33_v42 = vld [vmem:[#allocation2 + $0x10] sm:$0xff]  ;;  %v34_v43 = vld [vmem:[#allocation2 + $0x18] sm:$0xff]  ;;  %s266_s24 = sshll.u32 %s397_s3, 4  ;;  %s267_s24 = int_to_ptr.hbm [resolvable:$true] %s266_s24 }
   0xb   :  { %v81_v19 = vfloor.f32 %v61_v10  ;;  %v82_v20 = vfloor.f32 %v62_v11  ;;  %v109_v22 = vmul.f32 1.5258789e-05, %v89_v13  ;;  %v110_v23 = vmul.f32 1.5258789e-05, %v90_v14  ;;  %v39_v58 = vld [vmem:[#allocation2 + $0x40] sm:$0xff]  ;;  %v40_v59 = vld [vmem:[#allocation2 + $0x48] sm:$0xff]  ;;  %s352_s25 = smov 256   ;;  %s353_s26 = smov 16  }
   0xc   :  { %v105_v24 = vmul.f32 1.5258789e-05, %v85_v15  ;;  %v87_v25 = vfloor.f32 %v67_v16  ;;  %v106_v26 = vmul.f32 1.5258789e-05, %v86_v18  ;;  %v88_v29 = vfloor.f32 %v68_v21  ;;  %v35_v16 = vld [vmem:[#allocation2 + $0x20] sm:$0xff]  ;;  %v36_v17 = vld [vmem:[#allocation2 + $0x28] sm:$0xff] }
   0xd   :  { %v101_v27 = vmul.f32 1.5258789e-05, %v81_v19  ;;  %v102_v28 = vmul.f32 1.5258789e-05, %v82_v20  ;;  %v129_v32 = vmax.f32 %v109_v22, -32768.0  ;;  %v130_v33 = vmax.f32 %v110_v23, -32768.0  ;;  %v31_v22 = vld [vmem:[#allocation2] sm:$0xff]  ;;  %v32_v23 = vld [vmem:[#allocation2 + $0x8] sm:$0xff] }
   0xe   :  { %v125_v34 = vmax.f32 %v105_v24, -32768.0  ;;  %v107_v35 = vmul.f32 1.5258789e-05, %v87_v25  ;;  %v126_v38 = vmax.f32 %v106_v26, -32768.0  ;;  %v108_v41 = vmul.f32 1.5258789e-05, %v88_v29 }
   0xf   :  { %v121_v39 = vmax.f32 %v101_v27, -32768.0  ;;  %v122_v40 = vmax.f32 %v102_v28, -32768.0  ;;  %v149_v44 = vmin.f32 %v129_v32, 32767.0  ;;  %v150_v45 = vmin.f32 %v130_v33, 32767.0 }
  0x10   :  { %v145_v46 = vmin.f32 %v125_v34, 32767.0  ;;  %v146_v47 = vmin.f32 %v126_v38, 32767.0  ;;  %v127_v50 = vmax.f32 %v107_v35, -32768.0  ;;  %v128_v51 = vmax.f32 %v108_v41, -32768.0 }
  0x11   :  { %v141_v48 = vmin.f32 %v121_v39, 32767.0  ;;  %v142_v49 = vmin.f32 %v122_v40, 32767.0  ;;  %283 = vmatpush.msk.msra.mxu2 %vm162_vm0, %v149_v44  ;;  %285 = vmatpush.msk.msra.mxu3 %vm162_vm0, %v150_v45  ;;  %v57_v52 = vmul.f32 65536.0, %v37_v30  ;;  %v58_v53 = vmul.f32 65536.0, %v38_v31 }
  0x12   :  { %v63_v54 = vmul.f32 65536.0, %v43_v36  ;;  %v64_v55 = vmul.f32 65536.0, %v44_v37  ;;  %v53_v56 = vmul.f32 65536.0, %v33_v42  ;;  %v54_v57 = vmul.f32 65536.0, %v34_v43  ;;  %v151_v32 = vld [vmem:[%s395_s1] sm:$0xff] }
  0x13   :  { %227 = vmatpush.msra.mxu2 %v145_v46  ;;  %247 = vmatpush.msra.mxu3 %v146_v47  ;;  %v147_v60 = vmin.f32 %v127_v50, 32767.0  ;;  %v148_v61 = vmin.f32 %v128_v51, 32767.0  ;;  %v77_v62 = vfloor.f32 %v57_v52  ;;  %v78_v63 = vfloor.f32 %v58_v53  ;;  %v152_v45 = vld [vmem:[%s396_s2] sm:$0xff]  ;;  %s351_s2 = smov [#allocation5]  }
  0x14   :  { %vm158_vm1 = vcmask 293888   ;;  %v83_v0 = vfloor.f32 %v63_v54  ;;  %v84_v1 = vfloor.f32 %v64_v55  ;;  %v73_v2 = vfloor.f32 %v53_v56  ;;  %s264_s21 = sshll.u32 %s351_s2, 4  ;;  %s265_s21 = int_to_ptr.vmem [resolvable:$true] %s264_s21 }
  0x15   :  { %v74_v3 = vfloor.f32 %v54_v57  ;;  %228 = vmatpush.msra.mxu2 %v141_v48  ;;  %248 = vmatpush.msra.mxu3 %v142_v49  ;;  %v97_v4 = vmul.f32 1.5258789e-05, %v77_v62  ;;  %v98_v5 = vmul.f32 1.5258789e-05, %v78_v63  ;;  %v59_v6 = vmul.f32 65536.0, %v39_v58 }
  0x16   :  { %v60_v7 = vmul.f32 65536.0, %v40_v59  ;;  %279 = vmatpush.msk.msra.mxu0 %vm162_vm0, %v147_v60  ;;  %281 = vmatpush.msk.msra.mxu1 %vm162_vm0, %v148_v61  ;;  %v103_v8 = vmul.f32 1.5258789e-05, %v83_v0  ;;  %v104_v9 = vmul.f32 1.5258789e-05, %v84_v1  ;;  %v93_v10 = vmul.f32 1.5258789e-05, %v73_v2 }
  0x17   :  { %v94_v11 = vmul.f32 1.5258789e-05, %v74_v3  ;;  %v117_v12 = vmax.f32 %v97_v4, -32768.0  ;;  %v118_v13 = vmax.f32 %v98_v5, -32768.0  ;;  %v79_v14 = vfloor.f32 %v59_v6 }
  0x18   :  { %v80_v15 = vfloor.f32 %v60_v7  ;;  %v123_v18 = vmax.f32 %v103_v8, -32768.0  ;;  %v124_v19 = vmax.f32 %v104_v9, -32768.0  ;;  %v113_v20 = vmax.f32 %v93_v10, -32768.0 }
  0x19   :  { %v114_v21 = vmax.f32 %v94_v11, -32768.0  ;;  %v137_v24 = vmin.f32 %v117_v12, 32767.0  ;;  %v138_v25 = vmin.f32 %v118_v13, 32767.0  ;;  %v99_v26 = vmul.f32 1.5258789e-05, %v79_v14 }
  0x1a   :  { %v100_v27 = vmul.f32 1.5258789e-05, %v80_v15  ;;  %v143_v28 = vmin.f32 %v123_v18, 32767.0  ;;  %v144_v29 = vmin.f32 %v124_v19, 32767.0  ;;  %v55_v35 = vmul.f32 65536.0, %v35_v16 }
  0x1b   :  { %v133_v30 = vmin.f32 %v113_v20, 32767.0  ;;  %229 = vmatpush.msra.mxu2 %v137_v24  ;;  %249 = vmatpush.msra.mxu3 %v138_v25  ;;  %v134_v31 = vmin.f32 %v114_v21, 32767.0  ;;  %v119_v33 = vmax.f32 %v99_v26, -32768.0  ;;  %v56_v36 = vmul.f32 65536.0, %v36_v17 }
  0x1c   :  { %v120_v34 = vmax.f32 %v100_v27, -32768.0  ;;  %187 = vmatpush.msra.mxu0 %v143_v28  ;;  %207 = vmatpush.msra.mxu1 %v144_v29  ;;  %v51_v37 = vmul.f32 65536.0, %v31_v22  ;;  %v52_v38 = vmul.f32 65536.0, %v32_v23  ;;  %v75_v41 = vfloor.f32 %v55_v35 }
  0x1d   :  { %230 = vmatpush.msra.mxu2 %v133_v30  ;;  %250 = vmatpush.msra.mxu3 %v134_v31  ;;  %v139_v39 = vmin.f32 %v119_v33, 32767.0  ;;  %v76_v42 = vfloor.f32 %v56_v36  ;;  %v350_v50 = vmov 0  }
  0x1e   :  { %v140_v40 = vmin.f32 %v120_v34, 32767.0  ;;  %284 = vmatmul.msk.f32.vlgmr.msra.gmra.mxu2 %vm158_vm1, %v151_v32  ;;  %286 = vmatmul.msk.f32.vlgmr.msra.gmra.mxu3 %vm158_vm1, %v151_v32  ;;  %v71_v43 = vfloor.f32 %v51_v37  ;;  %v72_v44 = vfloor.f32 %v52_v38  ;;  %v95_v46 = vmul.f32 1.5258789e-05, %v75_v41 }
  0x1f   :  { %188 = vmatpush.msra.mxu0 %v139_v39  ;;  %v96_v47 = vmul.f32 1.5258789e-05, %v76_v42  ;;  %294 = vset.pattern.permute.xlu0 %v350_v50 }
  0x20   :  { %208 = vmatpush.msra.mxu1 %v140_v40  ;;  %v91_v48 = vmul.f32 1.5258789e-05, %v71_v43  ;;  %v92_v49 = vmul.f32 1.5258789e-05, %v72_v44  ;;  %v115_v51 = vmax.f32 %v95_v46, -32768.0  ;;  %155 = vperm.xlu0 %294, %v152_v45  }
  0x21   :  { %v116_v52 = vmax.f32 %v96_v47, -32768.0 }
  0x22   :  { %v111_v53 = vmax.f32 %v91_v48, -32768.0  ;;  %v112_v54 = vmax.f32 %v92_v49, -32768.0  ;;  %v135_v55 = vmin.f32 %v115_v51, 32767.0 }
  0x23   :  { %v136_v56 = vmin.f32 %v116_v52, 32767.0 }
  0x24   :  { %v131_v57 = vmin.f32 %v111_v53, 32767.0  ;;  %v132_v58 = vmin.f32 %v112_v54, 32767.0  ;;  %189 = vmatpush.msra.mxu0 %v135_v55 }
  0x25   :  { %209 = vmatpush.msra.mxu1 %v136_v56 }
  0x26   :  { %190 = vmatpush.msra.mxu0 %v131_v57 }
  0x27   :  { %210 = vmatpush.msra.mxu1 %v132_v58  ;;  %280 = vmatmul.msk.f32.vlgmr.msra.gmra.mxu0 %vm158_vm1, %v151_v32 }
  0x28   :  { %282 = vmatmul.msk.f32.vlgmr.msra.gmra.mxu1 %vm158_vm1, %v151_v32 }
  0x92   :  { %v156_v59 = vpop.permute.xlu0 %155 }
  0xa1   :  { %v232_v60 = vpop.f32.mrf.mxu2  ;;  %v252_v61 = vpop.f32.mrf.mxu3 }
  0xa2   :  { %v233_v62 = vadd.f32 %v232_v60, %v156_v59  ;;  %v253_v63 = vadd.f32 %v252_v61, %v156_v59 }
  0xa4   :  { %258 = vst [vmem:[#allocation5 + $0x10] sm:$0xff] %v233_v62  ;;  %v192_v0 = vpop.f32.mrf.mxu0 }
  0xa5   :  { %259 = vst [vmem:[#allocation5 + $0x18] sm:$0xff] %v253_v63  ;;  %v193_v1 = vadd.f32 %v192_v0, %v156_v59  ;;  %v212_v2 = vpop.f32.mrf.mxu1 }
  0xa6   :  { %v213_v3 = vadd.f32 %v212_v2, %v156_v59 }
  0xa7   :  { %255 = vst [vmem:[#allocation5] sm:$0xff] %v193_v1 }
  0xa8   :  { %256 = vst [vmem:[#allocation5 + $0x8] sm:$0xff] %v213_v3 }
  0xa9   :  { %272 = dma.vmem_to_hbm [thread:$0]  %s265_s21, 512, %s267_s24, [#allocation4], %s352_s25, %s352_s25, %s353_s26  }
  0xaa   :  { %345 = dma.done.wait [#allocation4], 512  }
  0xab   :  { %346 = vsyncadd [#allocation4], 4294966784 }
  0xac   :  { %277 = vsyncpa [#allocation3], 1 }
  0xad   :  { %278 = vsyncpa [#allocation4], 1 }

</bundles_post_ra>
